<compile_context>
chip_gen: v6e
topology: v6e:2x2x1
jax: 0.10.0
libtpu: 0.0.40
codegen_flags: <defaults>
</compile_context>

<pallas_src>
import jax
import jax.numpy as jnp
from jax.experimental import pallas as pl
from jax.experimental.pallas import tpu as pltpu


# ---------------------------------------------------------------------------
# Fused kernel: encoder (K-tiled matmul) + projector epilogue
# ---------------------------------------------------------------------------
def _fused_simsiam_kernel(x_ref, w_enc_ref, w1_ref, gamma_ref, beta_ref,
                          w2_ref, out_ref, acc_ref):
    """One grid step = one K-chunk of the encoder contraction.

    z = x @ W_enc is accumulated over k in an f32 VMEM scratch; on the last
    k step the projector runs fused on the resident z and the (p | z) slab
    is stored with a single 256-lane write.
    """
    k = pl.program_id(0)

    # Encoder partial product: bf16 MXU operands (x cast in-kernel), f32 acc.
    partial = jnp.dot(
        x_ref[...].astype(jnp.bfloat16), w_enc_ref[...],
        preferred_element_type=jnp.float32,
    )

    @pl.when(k == 0)
    def _():
        acc_ref[...] = partial            # no zero-fill / RMW on first chunk

    @pl.when(k > 0)
    def _():
        acc_ref[...] += partial

    @pl.when(k == pl.num_programs(0) - 1)
    def _():
        z = acc_ref[...]                                  # (2B, D_enc) f32

        # h = z @ W1^T        (2B, D_enc) @ (D_enc, H) -> (2B, H)
        h = jnp.dot(z.astype(jnp.bfloat16), w1_ref[...],
                    preferred_element_type=jnp.float32)

        # LayerNorm over last dim (PyTorch semantics: biased var, eps=1e-5).
        # Two-pass statistics in f32; affine folded into one scale/shift.
        mu = jnp.mean(h, axis=-1, keepdims=True)
        d = h - mu
        var = jnp.mean(d * d, axis=-1, keepdims=True)
        s = gamma_ref[...] * jax.lax.rsqrt(var + 1e-5)
        hn = h * s + (beta_ref[...] - mu * s)

        # ReLU
        a = jnp.maximum(hn, 0.0)

        # p = relu(...) @ W2^T   (2B, H) @ (H, D_enc) -> (2B, D_enc)
        p = jnp.dot(a.astype(jnp.bfloat16), w2_ref[...],
                    preferred_element_type=jnp.float32)

        # Single lane-dense (2B, 2*D_enc) store: [p | z].
        out_ref[...] = jnp.concatenate([p, z], axis=-1)


# ---------------------------------------------------------------------------
# Wrapper
# ---------------------------------------------------------------------------
def _pick_tk(F):
    # Biggest K tile (multiple of 128) that divides F; fall back to full F.
    for tk in (4096, 2048, 1024, 512, 256, 128):
        if F % tk == 0:
            return tk
    return F


def _simsiam_fused_call(x, w_enc, w1_t, gamma, beta, w2_t):
    rows, F = x.shape                    # rows = 2B (both views merged into M)
    D_enc = w_enc.shape[1]
    dim = w1_t.shape[1]
    tk = _pick_tk(F)
    nk = F // tk

    out = pl.pallas_call(
        _fused_simsiam_kernel,
        out_shape=jax.ShapeDtypeStruct((rows, 2 * D_enc), jnp.float32),
        grid_spec=pltpu.PrefetchScalarGridSpec(
            num_scalar_prefetch=0,
            grid=(nk,),
            in_specs=[
                pl.BlockSpec((rows, tk), lambda k: (0, k)),      # x (f32)
                pl.BlockSpec((tk, D_enc), lambda k: (k, 0)),     # w_enc (bf16)
                pl.BlockSpec((D_enc, dim), lambda k: (0, 0)),    # w1^T (bf16)
                pl.BlockSpec((1, dim), lambda k: (0, 0)),        # gamma (f32)
                pl.BlockSpec((1, dim), lambda k: (0, 0)),        # beta (f32)
                pl.BlockSpec((dim, D_enc), lambda k: (0, 0)),    # w2^T (bf16)
            ],
            out_specs=pl.BlockSpec((rows, 2 * D_enc), lambda k: (0, 0)),
            scratch_shapes=[pltpu.VMEM((rows, D_enc), jnp.float32)],
        ),
        compiler_params=pltpu.CompilerParams(
            dimension_semantics=("arbitrary",),
            vmem_limit_bytes=32 * 1024 * 1024),
    )(x, w_enc, w1_t, gamma, beta, w2_t)
    return out


@jax.jit
def _forward_impl(params, x1, x2):
    B = x1.shape[0]
    D_enc = params["w_enc"].shape[1]
    # Merge both views into the M dimension; keep f32 (bf16 cast happens
    # in-kernel so no extra HBM copy of the activations).
    x = jnp.concatenate([x1.reshape(B, -1), x2.reshape(B, -1)], axis=0)
    out = _simsiam_fused_call(
        x,
        params["w_enc"],     # stored bf16
        params["w1_t"],      # stored bf16
        params["gamma"],     # f32
        params["beta"],      # f32
        params["w2_t"],      # stored bf16
    )
    p = out[:, :D_enc]
    z = out[:, D_enc:]
    p1, p2 = p[:B], p[B:]
    z1, z2 = z[:B], z[B:]
    # .detach() == stop_gradient
    return p1, p2, jax.lax.stop_gradient(z1), jax.lax.stop_gradient(z2)


def simsiam_forward(params, x1, x2, cls_or_anchor="cls"):
    # TODO(synk): `cls_or_anchor` only dispatches inside the black-box base
    # encoder in the original module; the stand-in encoder ignores it.
    del cls_or_anchor
    return _forward_impl(params, x1, x2)


# ---------------------------------------------------------------------------
# Deterministic parameter init (mirrors Projector.init: xavier_normal, relu gain)
# Matmul weights stored in bf16 (the kernel's MXU operand dtype).
# ---------------------------------------------------------------------------
def init_params(key, in_features, prev_dim, dim):
    k_enc, k_w1, k_w2 = jax.random.split(key, 3)
    gain = jnp.sqrt(2.0)  # nn.init.calculate_gain('relu')

    # stand-in encoder weight: (C*H*W, prev_dim)
    w_enc = jax.random.normal(k_enc, (in_features, prev_dim), jnp.float32) * (
        1.0 / jnp.sqrt(in_features)
    )

    # Projector.w1: nn.Linear(prev_dim, dim, bias=False), weight (dim, prev_dim)
    std1 = gain * jnp.sqrt(2.0 / (prev_dim + dim))
    w1 = jax.random.normal(k_w1, (dim, prev_dim), jnp.float32) * std1
    # Projector.w2: nn.Linear(dim, prev_dim, bias=False), weight (prev_dim, dim)
    std2 = gain * jnp.sqrt(2.0 / (dim + prev_dim))
    w2 = jax.random.normal(k_w2, (prev_dim, dim), jnp.float32) * std2

    return {
        "w_enc": w_enc.astype(jnp.bfloat16),              # (F, prev_dim)
        "w1_t": w1.T.astype(jnp.bfloat16),                # (prev_dim, dim)
        "gamma": jnp.ones((1, dim), jnp.float32),         # LayerNorm weight
        "beta": jnp.zeros((1, dim), jnp.float32),         # LayerNorm bias
        "w2_t": w2.T.astype(jnp.bfloat16),                # (dim, prev_dim)
    }


# ---------------------------------------------------------------------------
# Pure-JAX reference (same bf16 operand casts, for numeric verification)
# ---------------------------------------------------------------------------
def _reference_forward(params, x1, x2):
    def enc(x):
        B = x.shape[0]
        xf = x.reshape(B, -1).astype(jnp.bfloat16)
        return jnp.dot(xf, params["w_enc"],
                       preferred_element_type=jnp.float32)

    def proj(z):
        h = jnp.dot(z.astype(jnp.bfloat16), params["w1_t"],
                    preferred_element_type=jnp.float32)
        mu = jnp.mean(h, axis=-1, keepdims=True)
        var = jnp.mean((h - mu) ** 2, axis=-1, keepdims=True)
        hn = (h - mu) * jax.lax.rsqrt(var + 1e-5)
        hn = hn * params["gamma"] + params["beta"]
        a = jnp.maximum(hn, 0.0)
        return jnp.dot(a.astype(jnp.bfloat16), params["w2_t"],
                       preferred_element_type=jnp.float32)

    z1, z2 = enc(x1), enc(x2)
    return proj(z1), proj(z2), z1, z2


# ---------------------------------------------------------------------------
if __name__ == "__main__":
    # small shapes: batch=8, channels=4, spatial=16x16 (NCHW, like PyTorch)
    B, C, H, W = 8, 4, 16, 16
    prev_dim = 128   # base_encoder_out_dim
    dim = 256        # projector hidden dim

    key = jax.random.PRNGKey(0)
    kx1, kx2, kp = jax.random.split(key, 3)
    x1 = jax.random.normal(kx1, (B, C, H, W), jnp.float32)
    x2 = jax.random.normal(kx2, (B, C, H, W), jnp.float32)

    params = init_params(kp, C * H * W, prev_dim, dim)

    p1, p2, z1, z2 = simsiam_forward(params, x1, x2, "cls")
    jax.block_until_ready((p1, p2, z1, z2))

    assert p1.shape == (B, prev_dim) and p2.shape == (B, prev_dim)
    assert z1.shape == (B, prev_dim) and z2.shape == (B, prev_dim)

    # numeric check against the pure-JAX reference (same bf16 operand casts)
    rp1, rp2, rz1, rz2 = _reference_forward(params, x1, x2)
    for got, want in ((p1, rp1), (p2, rp2), (z1, rz1), (z2, rz2)):
        scale = jnp.maximum(jnp.max(jnp.abs(want)), 1.0)
        assert float(jnp.max(jnp.abs(got - want)) / scale) < 5e-3

    print("KERNEL_OK")
</pallas_src>

<mosaic_0001>
module attributes {stable_mosaic.version = 11 : i64} {
  func.func @_fused_simsiam_kernel(%arg0: i32, %arg1: memref<16x1024xf32, #tpu.memory_space<vmem>>, %arg2: memref<1024x128xbf16, #tpu.memory_space<vmem>>, %arg3: memref<128x256xbf16, #tpu.memory_space<vmem>>, %arg4: memref<1x256xf32, #tpu.memory_space<vmem>>, %arg5: memref<1x256xf32, #tpu.memory_space<vmem>>, %arg6: memref<256x128xbf16, #tpu.memory_space<vmem>>, %arg7: memref<16x256xf32, #tpu.memory_space<vmem>>, %arg8: memref<16x128xf32, #tpu.memory_space<vmem>>) attributes {dimension_semantics = [#tpu.dimension_semantics<arbitrary>], iteration_bounds = array<i64: 1>, scalar_prefetch = 0 : i64, scratch_operands = 1 : i64, tpu.core_type = #tpu.core_type<tc>, window_params = [{transform_indices = @transform_0, window_bounds = array<i64: 16, 1024>}, {transform_indices = @transform_1, window_bounds = array<i64: 1024, 128>}, {pipeline_mode = #tpu.pipeline_mode<synchronous>, transform_indices = @transform_2, window_bounds = array<i64: 128, 256>}, {pipeline_mode = #tpu.pipeline_mode<synchronous>, transform_indices = @transform_3, window_bounds = array<i64: 1, 256>}, {pipeline_mode = #tpu.pipeline_mode<synchronous>, transform_indices = @transform_4, window_bounds = array<i64: 1, 256>}, {pipeline_mode = #tpu.pipeline_mode<synchronous>, transform_indices = @transform_5, window_bounds = array<i64: 256, 128>}, {pipeline_mode = #tpu.pipeline_mode<synchronous>, transform_indices = @transform_6, window_bounds = array<i64: 16, 256>}]} {
    %c0 = arith.constant 0 : index
    %c0_0 = arith.constant 0 : index
    %0 = vector.load %arg1[%c0, %c0_0] : memref<16x1024xf32, #tpu.memory_space<vmem>>, vector<16x1024xf32>
    %1 = arith.truncf %0 : vector<16x1024xf32> to vector<16x1024xbf16>
    %c0_1 = arith.constant 0 : index
    %c0_2 = arith.constant 0 : index
    %2 = vector.load %arg2[%c0_1, %c0_2] : memref<1024x128xbf16, #tpu.memory_space<vmem>>, vector<1024x128xbf16>
    %cst = arith.constant dense<0.000000e+00> : vector<16x128xf32>
    %3 = tpu.matmul %1, %2, %cst {dimension_numbers = #tpu.dot_dimension_numbers<[1], [0], [0], [1], [0, 0, 1, 1], [], []>} : vector<16x1024xbf16>, vector<1024x128xbf16>, vector<16x128xf32> -> vector<16x128xf32>
    %c0_i32 = arith.constant 0 : i32
    %4 = arith.cmpi eq, %arg0, %c0_i32 : i32
    %5 = arith.extui %4 : i1 to i32
    %c0_i32_3 = arith.constant 0 : i32
    %6 = arith.cmpi ne, %5, %c0_i32_3 : i32
    scf.if %6 {
      %c0_8 = arith.constant 0 : index
      %c0_9 = arith.constant 0 : index
      %13 = vector.load %arg8[%c0_8, %c0_9] : memref<16x128xf32, #tpu.memory_space<vmem>>, vector<16x128xf32>
      tpu.vector_store %arg8[%c0_8, %c0_9], %3 {strides = array<i32>} : memref<16x128xf32, #tpu.memory_space<vmem>>, vector<16x128xf32>,
    } else {
    }
    %c0_i32_4 = arith.constant 0 : i32
    %7 = arith.cmpi sgt, %arg0, %c0_i32_4 : i32
    %8 = arith.extui %7 : i1 to i32
    %c0_i32_5 = arith.constant 0 : i32
    %9 = arith.cmpi ne, %8, %c0_i32_5 : i32
    scf.if %9 {
      %c0_8 = arith.constant 0 : index
      %c0_9 = arith.constant 0 : index
      %13 = vector.load %arg8[%c0_8, %c0_9] : memref<16x128xf32, #tpu.memory_space<vmem>>, vector<16x128xf32>
      %14 = arith.addf %13, %3 : vector<16x128xf32>
      %c0_10 = arith.constant 0 : index
      %c0_11 = arith.constant 0 : index
      %15 = vector.load %arg8[%c0_10, %c0_11] : memref<16x128xf32, #tpu.memory_space<vmem>>, vector<16x128xf32>
      tpu.vector_store %arg8[%c0_10, %c0_11], %14 {strides = array<i32>} : memref<16x128xf32, #tpu.memory_space<vmem>>, vector<16x128xf32>,
    } else {
    }
    %c0_i32_6 = arith.constant 0 : i32
    %10 = arith.cmpi eq, %arg0, %c0_i32_6 : i32
    %11 = arith.extui %10 : i1 to i32
    %c0_i32_7 = arith.constant 0 : i32
    %12 = arith.cmpi ne, %11, %c0_i32_7 : i32
    scf.if %12 {
      %c0_8 = arith.constant 0 : index
      %c0_9 = arith.constant 0 : index
      %13 = vector.load %arg8[%c0_8, %c0_9] : memref<16x128xf32, #tpu.memory_space<vmem>>, vector<16x128xf32>
      %14 = arith.truncf %13 : vector<16x128xf32> to vector<16x128xbf16>
      %c0_10 = arith.constant 0 : index
      %c0_11 = arith.constant 0 : index
      %15 = vector.load %arg3[%c0_10, %c0_11] : memref<128x256xbf16, #tpu.memory_space<vmem>>, vector<128x256xbf16>
      %cst_12 = arith.constant dense<0.000000e+00> : vector<16x256xf32>
      %16 = tpu.matmul %14, %15, %cst_12 {dimension_numbers = #tpu.dot_dimension_numbers<[1], [0], [0], [1], [0, 0, 1, 1], [], []>} : vector<16x128xbf16>, vector<128x256xbf16>, vector<16x256xf32> -> vector<16x256xf32>
      %cst_13 = arith.constant dense<0.000000e+00> : vector<16xf32>
      %17 = vector.multi_reduction <add>, %16, %cst_13 [1] : vector<16x256xf32> to vector<16xf32>
      %18 = vector.shape_cast %17 : vector<16xf32> to vector<16x1xf32>
      %cst_14 = arith.constant 2.560000e+02 : f32
      %19 = vector.broadcast %cst_14 : f32 to vector<16x1xf32>
      %20 = arith.divf %18, %19 : vector<16x1xf32>
      %21 = vector.broadcast %20 : vector<16x1xf32> to vector<16x256xf32>
      %22 = arith.subf %16, %21 : vector<16x256xf32>
      %23 = arith.mulf %22, %22 : vector<16x256xf32>
      %cst_15 = arith.constant dense<0.000000e+00> : vector<16xf32>
      %24 = vector.multi_reduction <add>, %23, %cst_15 [1] : vector<16x256xf32> to vector<16xf32>
      %25 = vector.shape_cast %24 : vector<16xf32> to vector<16x1xf32>
      %cst_16 = arith.constant 2.560000e+02 : f32
      %26 = vector.broadcast %cst_16 : f32 to vector<16x1xf32>
      %27 = arith.divf %25, %26 : vector<16x1xf32>
      %c0_17 = arith.constant 0 : index
      %c0_18 = arith.constant 0 : index
      %28 = vector.load %arg4[%c0_17, %c0_18] : memref<1x256xf32, #tpu.memory_space<vmem>>, vector<1x256xf32>
      %cst_19 = arith.constant 9.99999974E-6 : f32
      %29 = vector.broadcast %cst_19 : f32 to vector<16x1xf32>
      %30 = arith.addf %27, %29 : vector<16x1xf32>
      %31 = math.rsqrt %30 : vector<16x1xf32>
      %32 = vector.broadcast %28 : vector<1x256xf32> to vector<16x256xf32>
      %33 = vector.broadcast %31 : vector<16x1xf32> to vector<16x256xf32>
      %34 = arith.mulf %32, %33 : vector<16x256xf32>
      %35 = arith.mulf %16, %34 : vector<16x256xf32>
      %c0_20 = arith.constant 0 : index
      %c0_21 = arith.constant 0 : index
      %36 = vector.load %arg5[%c0_20, %c0_21] : memref<1x256xf32, #tpu.memory_space<vmem>>, vector<1x256xf32>
      %37 = vector.broadcast %20 : vector<16x1xf32> to vector<16x256xf32>
      %38 = arith.mulf %37, %34 : vector<16x256xf32>
      %39 = vector.broadcast %36 : vector<1x256xf32> to vector<16x256xf32>
      %40 = arith.subf %39, %38 : vector<16x256xf32>
      %41 = arith.addf %35, %40 : vector<16x256xf32>
      %cst_22 = arith.constant 0.000000e+00 : f32
      %42 = vector.broadcast %cst_22 : f32 to vector<16x256xf32>
      %43 = arith.maximumf %41, %42 : vector<16x256xf32>
      %44 = arith.truncf %43 : vector<16x256xf32> to vector<16x256xbf16>
      %c0_23 = arith.constant 0 : index
      %c0_24 = arith.constant 0 : index
      %45 = vector.load %arg6[%c0_23, %c0_24] : memref<256x128xbf16, #tpu.memory_space<vmem>>, vector<256x128xbf16>
      %cst_25 = arith.constant dense<0.000000e+00> : vector<16x128xf32>
      %46 = tpu.matmul %44, %45, %cst_25 {dimension_numbers = #tpu.dot_dimension_numbers<[1], [0], [0], [1], [0, 0, 1, 1], [], []>} : vector<16x256xbf16>, vector<256x128xbf16>, vector<16x128xf32> -> vector<16x128xf32>
      %47 = tpu.concatenate %46, %13 in 1 : vector<16x128xf32>, vector<16x128xf32> -> vector<16x256xf32>
      %c0_26 = arith.constant 0 : index
      %c0_27 = arith.constant 0 : index
      %48 = vector.load %arg7[%c0_26, %c0_27] : memref<16x256xf32, #tpu.memory_space<vmem>>, vector<16x256xf32>
      tpu.vector_store %arg7[%c0_26, %c0_27], %47 {strides = array<i32>} : memref<16x256xf32, #tpu.memory_space<vmem>>, vector<16x256xf32>,
    } else {
    }
    return
  }
  func.func @transform_0(%arg0: i32) -> (i32, i32) {
    %c0_i32 = arith.constant 0 : i32
    %c0_i32_0 = arith.constant 0 : i32
    return %c0_i32, %arg0 : i32, i32
  }
  func.func @transform_1(%arg0: i32) -> (i32, i32) {
    %c0_i32 = arith.constant 0 : i32
    %c0_i32_0 = arith.constant 0 : i32
    return %arg0, %c0_i32 : i32, i32
  }
  func.func @transform_2(%arg0: i32) -> (i32, i32) {
    %c0_i32 = arith.constant 0 : i32
    %c0_i32_0 = arith.constant 0 : i32
    %c0_i32_1 = arith.constant 0 : i32
    return %c0_i32, %c0_i32_0 : i32, i32
  }
  func.func @transform_3(%arg0: i32) -> (i32, i32) {
    %c0_i32 = arith.constant 0 : i32
    %c0_i32_0 = arith.constant 0 : i32
    %c0_i32_1 = arith.constant 0 : i32
    return %c0_i32, %c0_i32_0 : i32, i32
  }
  func.func @transform_4(%arg0: i32) -> (i32, i32) {
    %c0_i32 = arith.constant 0 : i32
    %c0_i32_0 = arith.constant 0 : i32
    %c0_i32_1 = arith.constant 0 : i32
    return %c0_i32, %c0_i32_0 : i32, i32
  }
  func.func @transform_5(%arg0: i32) -> (i32, i32) {
    %c0_i32 = arith.constant 0 : i32
    %c0_i32_0 = arith.constant 0 : i32
    %c0_i32_1 = arith.constant 0 : i32
    return %c0_i32, %c0_i32_0 : i32, i32
  }
  func.func @transform_6(%arg0: i32) -> (i32, i32) {
    %c0_i32 = arith.constant 0 : i32
    %c0_i32_0 = arith.constant 0 : i32
    %c0_i32_1 = arith.constant 0 : i32
    return %c0_i32, %c0_i32_0 : i32, i32
  }
}

</mosaic_0001>

<bundles_post_ra>
// kernel: _forward_impl.1
= control target key start
LH: loop header
LB: loop body
LE: loop exit
PB: predicated region body
PF: predicated region fallthrough
CT: control target
= control target key end

     0   :  { %s1878_s1 = inlined_call_operand.vmem [shape: bf16[1024,128], index: 1, kind: input, shape index: {}]   ;;  %s1879_s0 = inlined_call_operand.vmem [shape: f32[16,1024], index: 0, kind: input, shape index: {}]   ;;  %s1880_s2 = inlined_call_operand.vmem [shape: bf16[128,256], index: 2, kind: input, shape index: {}]   ;;  %s1881_s6 = inlined_call_operand.vmem [shape: f32[16,256], index: 6, kind: output, shape index: {}]   ;;  %s1882_s5 = inlined_call_operand.vmem [shape: bf16[256,128], index: 5, kind: input, shape index: {}]   ;;  %s1883_s3 = inlined_call_operand.vmem [shape: f32[1,256], index: 3, kind: input, shape index: {}]   ;;  %s1884_s4 = inlined_call_operand.vmem [shape: f32[1,256], index: 4, kind: input, shape index: {}]  }
   0x1   :  { %v1348_v0 = vld [vmem:[%s1878_s1 + $0x78] sm:$0xff]   ;;  %v1352_v4 = vld [vmem:[%s1878_s1 + $0x70] sm:$0xff]   ;;  %v1356_v8 = vld [vmem:[%s1878_s1 + $0x68] sm:$0xff]  }
   0x2   :  { %v1349_v1 = vld [vmem:[%s1878_s1 + $0xf8] sm:$0xff]   ;;  %1237 = vmatprep.subr.bf16.mxu0 %v1348_v0  ;;  %v1353_v5 = vld [vmem:[%s1878_s1 + $0xf0] sm:$0xff]   ;;  %v1357_v9 = vld [vmem:[%s1878_s1 + $0xe8] sm:$0xff]  }
   0x3   :  { %v1350_v2 = vld [vmem:[%s1878_s1 + $0x38] sm:$0xff]   ;;  %1259 = vmatprep.subr.bf16.mxu1 %v1349_v1  ;;  %v1354_v6 = vld [vmem:[%s1878_s1 + $0x30] sm:$0xff]   ;;  %v1358_v10 = vld [vmem:[%s1878_s1 + $0x28] sm:$0xff]  }
   0x4   :  { %v1351_v3 = vld [vmem:[%s1878_s1 + $0xb8] sm:$0xff]   ;;  %1238 = vmatpush3.bf16.msra.mxu0 %v1350_v2  ;;  %v1355_v7 = vld [vmem:[%s1878_s1 + $0xb0] sm:$0xff]   ;;  %v1359_v11 = vld [vmem:[%s1878_s1 + $0xa8] sm:$0xff]  }
   0x5   :  { %1260 = vmatpush3.bf16.msra.mxu1 %v1351_v3  ;;  %1239 = vmatprep.subr.bf16.mxu0 %v1352_v4  ;;  %v1360_v12 = vld [vmem:[%s1878_s1 + $0x60] sm:$0xff]   ;;  %v1364_v16 = vld [vmem:[%s1878_s1 + $0x58] sm:$0xff]   ;;  %v1368_v20 = vld [vmem:[%s1878_s1 + $0x50] sm:$0xff]  }
   0x6   :  { %1261 = vmatprep.subr.bf16.mxu1 %v1353_v5  ;;  %v1361_v13 = vld [vmem:[%s1878_s1 + $0xe0] sm:$0xff]   ;;  %v1365_v17 = vld [vmem:[%s1878_s1 + $0xd8] sm:$0xff]   ;;  %v1369_v21 = vld [vmem:[%s1878_s1 + $0xd0] sm:$0xff]  }
   0x7   :  { %v1362_v14 = vld [vmem:[%s1878_s1 + $0x20] sm:$0xff]   ;;  %v1366_v18 = vld [vmem:[%s1878_s1 + $0x18] sm:$0xff]   ;;  %v1370_v22 = vld [vmem:[%s1878_s1 + $0x10] sm:$0xff]  }
   0x8   :  { %1240 = vmatpush3.bf16.msra.mxu0 %v1354_v6  ;;  %v1363_v15 = vld [vmem:[%s1878_s1 + $0xa0] sm:$0xff]   ;;  %v1367_v19 = vld [vmem:[%s1878_s1 + $0x98] sm:$0xff]   ;;  %v1371_v23 = vld [vmem:[%s1878_s1 + $0x90] sm:$0xff]  }
   0x9   :  { %1262 = vmatpush3.bf16.msra.mxu1 %v1355_v7  ;;  %1241 = vmatprep.subr.bf16.mxu0 %v1356_v8  ;;  %v1372_v24 = vld [vmem:[%s1878_s1 + $0x48] sm:$0xff]   ;;  %v1376_v28 = vld [vmem:[%s1878_s1 + $0x40] sm:$0xff]   ;;  %v27_v34 = vld [vmem:[%s1879_s0 + $0x18] sm:$0xff] }
   0xa   :  { %1263 = vmatprep.subr.bf16.mxu1 %v1357_v9  ;;  %v1373_v25 = vld [vmem:[%s1878_s1 + $0xc8] sm:$0xff]   ;;  %v1377_v29 = vld [vmem:[%s1878_s1 + $0xc0] sm:$0xff]   ;;  %v35_v36 = vld [vmem:[%s1879_s0 + $0x58] sm:$0xff] }
   0xb   :  { %v1374_v26 = vld [vmem:[%s1878_s1 + $0x8] sm:$0xff]   ;;  %v1378_v30 = vld [vmem:[%s1878_s1] sm:$0xff]   ;;  %v43_v39 = vpack.c.bf16 %v35_v36, %v27_v34  ;;  %v26_v41 = vld [vmem:[%s1879_s0 + $0x10] sm:$0xff] }
   0xc   :  { %1242 = vmatpush3.bf16.msra.mxu0 %v1358_v10  ;;  %v1375_v27 = vld [vmem:[%s1878_s1 + $0x88] sm:$0xff]   ;;  %v1379_v31 = vld [vmem:[%s1878_s1 + $0x80] sm:$0xff]   ;;  %v34_v42 = vld [vmem:[%s1879_s0 + $0x50] sm:$0xff] }
   0xd   :  { %1264 = vmatpush3.bf16.msra.mxu1 %v1359_v11  ;;  %1243 = vmatprep.subr.bf16.mxu0 %v1360_v12  ;;  %v25_v32 = vld [vmem:[%s1879_s0 + $0x8] sm:$0xff]  ;;  %v24_v37 = vld [vmem:[%s1879_s0] sm:$0xff]  ;;  %v42_v43 = vpack.c.bf16 %v34_v42, %v26_v41  ;;  %v1380_v44 = vld [vmem:[%s1878_s1 + $0x178] sm:$0xff]  }
   0xe   :  { %1265 = vmatprep.subr.bf16.mxu1 %v1361_v13  ;;  %v33_v33 = vld [vmem:[%s1879_s0 + $0x48] sm:$0xff]  ;;  %v32_v38 = vld [vmem:[%s1879_s0 + $0x40] sm:$0xff]  ;;  %633 = vmatprep.mubr.bf16.mxu1 %v43_v39  ;;  %v1381_v45 = vld [vmem:[%s1878_s1 + $0x1f8] sm:$0xff]  }
   0xf   :  { %v41_v35 = vpack.c.bf16 %v33_v33, %v25_v32  ;;  %v40_v40 = vpack.c.bf16 %v32_v38, %v24_v37  ;;  %v1382_v46 = vld [vmem:[%s1878_s1 + $0x138] sm:$0xff]   ;;  %v1384_v48 = vld [vmem:[%s1878_s1 + $0x170] sm:$0xff]   ;;  %v1388_v52 = vld [vmem:[%s1878_s1 + $0x168] sm:$0xff]  }
  0x10   :  { %1244 = vmatpush3.bf16.msra.mxu0 %v1362_v14  ;;  %v1383_v47 = vld [vmem:[%s1878_s1 + $0x1b8] sm:$0xff]   ;;  %v1385_v49 = vld [vmem:[%s1878_s1 + $0x1f0] sm:$0xff]   ;;  %v1389_v53 = vld [vmem:[%s1878_s1 + $0x1e8] sm:$0xff]  }
  0x11   :  { %1266 = vmatpush3.bf16.msra.mxu1 %v1363_v15  ;;  %1245 = vmatprep.subr.bf16.mxu0 %v1364_v16  ;;  %v1386_v50 = vld [vmem:[%s1878_s1 + $0x130] sm:$0xff]   ;;  %v1390_v54 = vld [vmem:[%s1878_s1 + $0x128] sm:$0xff]   ;;  %v1392_v56 = vld [vmem:[%s1878_s1 + $0x160] sm:$0xff]  }
  0x12   :  { %1267 = vmatprep.subr.bf16.mxu1 %v1365_v17  ;;  %592 = vmatprep.mubr.bf16.mxu0 %v41_v35  ;;  %v1387_v51 = vld [vmem:[%s1878_s1 + $0x1b0] sm:$0xff]   ;;  %v1391_v55 = vld [vmem:[%s1878_s1 + $0x1a8] sm:$0xff]   ;;  %v1393_v57 = vld [vmem:[%s1878_s1 + $0x1e0] sm:$0xff]  }
  0x13   :  { %v1394_v58 = vld [vmem:[%s1878_s1 + $0x120] sm:$0xff]   ;;  %v1396_v60 = vld [vmem:[%s1878_s1 + $0x158] sm:$0xff]   ;;  %v1400_v0 = vld [vmem:[%s1878_s1 + $0x150] sm:$0xff]  }
  0x14   :  { %1246 = vmatpush3.bf16.msra.mxu0 %v1366_v18  ;;  %v1395_v59 = vld [vmem:[%s1878_s1 + $0x1a0] sm:$0xff]   ;;  %v1397_v61 = vld [vmem:[%s1878_s1 + $0x1d8] sm:$0xff]   ;;  %v1401_v1 = vld [vmem:[%s1878_s1 + $0x1d0] sm:$0xff]  }
  0x15   :  { %1268 = vmatpush3.bf16.msra.mxu1 %v1367_v19  ;;  %1247 = vmatprep.subr.bf16.mxu0 %v1368_v20  ;;  %v1398_v62 = vld [vmem:[%s1878_s1 + $0x118] sm:$0xff]   ;;  %v1402_v2 = vld [vmem:[%s1878_s1 + $0x110] sm:$0xff]   ;;  %v1404_v4 = vld [vmem:[%s1878_s1 + $0x148] sm:$0xff]  }
  0x16   :  { %1269 = vmatprep.subr.bf16.mxu1 %v1369_v21  ;;  %v1399_v63 = vld [vmem:[%s1878_s1 + $0x198] sm:$0xff]   ;;  %v1403_v3 = vld [vmem:[%s1878_s1 + $0x190] sm:$0xff]   ;;  %v1405_v5 = vld [vmem:[%s1878_s1 + $0x1c8] sm:$0xff]  }
  0x17   :  { %v1406_v6 = vld [vmem:[%s1878_s1 + $0x108] sm:$0xff]   ;;  %v1408_v8 = vld [vmem:[%s1878_s1 + $0x140] sm:$0xff]   ;;  %v31_v14 = vld [vmem:[%s1879_s0 + $0x38] sm:$0xff] }
  0x18   :  { %1248 = vmatpush3.bf16.msra.mxu0 %v1370_v22  ;;  %v1407_v7 = vld [vmem:[%s1878_s1 + $0x188] sm:$0xff]   ;;  %v1409_v9 = vld [vmem:[%s1878_s1 + $0x1c0] sm:$0xff]   ;;  %v39_v15 = vld [vmem:[%s1879_s0 + $0x78] sm:$0xff] }
  0x19   :  { %1270 = vmatpush3.bf16.msra.mxu1 %v1371_v23  ;;  %1249 = vmatprep.subr.bf16.mxu0 %v1372_v24  ;;  %v1410_v10 = vld [vmem:[%s1878_s1 + $0x100] sm:$0xff]   ;;  %v29_v12 = vld [vmem:[%s1879_s0 + $0x28] sm:$0xff]  ;;  %v47_v17 = vpack.c.bf16 %v39_v15, %v31_v14  ;;  %v30_v20 = vld [vmem:[%s1879_s0 + $0x30] sm:$0xff] }
  0x1a   :  { %1271 = vmatprep.subr.bf16.mxu1 %v1373_v25  ;;  %v1411_v11 = vld [vmem:[%s1878_s1 + $0x180] sm:$0xff]   ;;  %v37_v13 = vld [vmem:[%s1879_s0 + $0x68] sm:$0xff]  ;;  %v38_v22 = vld [vmem:[%s1879_s0 + $0x70] sm:$0xff] }
  0x1b   :  { %v45_v16 = vpack.c.bf16 %v37_v13, %v29_v12  ;;  %v28_v18 = vld [vmem:[%s1879_s0 + $0x20] sm:$0xff]  ;;  %v46_v23 = vpack.c.bf16 %v38_v22, %v30_v20  ;;  %v1412_v24 = vld [vmem:[%s1880_s2 + $0x70] ss:$8 sps:$4 sm:$0xff]   ;;  %v1414_v25 = vld [vmem:[%s1880_s2 + $0x74] ss:$8 sps:$4 sm:$0xff]  }
  0x1c   :  { %1250 = vmatpush3.bf16.msra.mxu0 %v1374_v26  ;;  %v36_v19 = vld [vmem:[%s1879_s0 + $0x60] sm:$0xff]  ;;  %v1426_v32 = vld [vmem:[%s1880_s2 + $0x34] ss:$8 sps:$4 sm:$0xff]   ;;  %v1424_v33 = vld [vmem:[%s1880_s2 + $0x30] ss:$8 sps:$4 sm:$0xff]  }
  0x1d   :  { %1272 = vmatpush3.bf16.msra.mxu1 %v1375_v27  ;;  %1251 = vmatprep.subr.bf16.mxu0 %v1376_v28  ;;  %v44_v21 = vpack.c.bf16 %v36_v19, %v28_v18  ;;  %v1417_v26 = vld [vmem:[%s1880_s2 + $0x64] ss:$8 sps:$4 sm:$0xff]   ;;  %v1415_v27 = vld [vmem:[%s1880_s2 + $0x60] ss:$8 sps:$4 sm:$0xff]   ;;  %v1420_v28 = vld [vmem:[%s1880_s2 + $0x54] ss:$8 sps:$4 sm:$0xff]  }
  0x1e   :  { %1273 = vmatprep.subr.bf16.mxu1 %v1377_v29  ;;  %v1418_v29 = vld [vmem:[%s1880_s2 + $0x50] ss:$8 sps:$4 sm:$0xff]   ;;  %v1429_v34 = vld [vmem:[%s1880_s2 + $0x24] ss:$8 sps:$4 sm:$0xff]   ;;  %v1427_v35 = vld [vmem:[%s1880_s2 + $0x20] ss:$8 sps:$4 sm:$0xff]  }
  0x1f   :  { %v1432_v36 = vld [vmem:[%s1880_s2 + $0x14] ss:$8 sps:$4 sm:$0xff]   ;;  %v1430_v37 = vld [vmem:[%s1880_s2 + $0x10] ss:$8 sps:$4 sm:$0xff]   ;;  %v1435_v38 = vld [vmem:[%s1880_s2 + $0x4] ss:$8 sps:$4 sm:$0xff]  }
  0x20   :  { %1252 = vmatpush3.bf16.msra.mxu0 %v1378_v30  ;;  %v1423_v30 = vld [vmem:[%s1880_s2 + $0x44] ss:$8 sps:$4 sm:$0xff]   ;;  %v1433_v39 = vld [vmem:[%s1880_s2] ss:$8 sps:$4 sm:$0xff]  }
  0x21   :  { %1274 = vmatpush3.bf16.msra.mxu1 %v1379_v31  ;;  %1281 = vmatprep.subr.bf16.mxu0 %v1380_v44  ;;  %v1421_v31 = vld [vmem:[%s1880_s2 + $0x40] ss:$8 sps:$4 sm:$0xff]  }
  0x22   :  { %1303 = vmatprep.subr.bf16.mxu1 %v1381_v45 }
  0x23   :  { %593 = vmatmul.mubr.bf16.vlgmr.msra.gmra.mxu0 %v40_v40  ;;  %v1456_v40 = vmov 0  }
  0x24   :  { %634 = vmatmul.mubr.bf16.vlgmr.msra.gmra.mxu1 %v42_v43  ;;  %1282 = vmatpush3.bf16.msra.mxu0 %v1382_v46 }
  0x25   :  { %1304 = vmatpush3.bf16.msra.mxu1 %v1383_v47  ;;  %1283 = vmatprep.subr.bf16.mxu0 %v1384_v48 }
  0x26   :  { %1305 = vmatprep.subr.bf16.mxu1 %v1385_v49  ;;  %674 = vmatprep.mubr.bf16.mxu0 %v45_v16 }
  0x27   :  { %715 = vmatprep.mubr.bf16.mxu1 %v47_v17 }
  0x28   :  { %1284 = vmatpush3.bf16.msra.mxu0 %v1386_v50 }
  0x29   :  { %1306 = vmatpush3.bf16.msra.mxu1 %v1387_v51  ;;  %1285 = vmatprep.subr.bf16.mxu0 %v1388_v52 }
  0x2a   :  { %1307 = vmatprep.subr.bf16.mxu1 %v1389_v53 }
  0x2c   :  { %1286 = vmatpush3.bf16.msra.mxu0 %v1390_v54 }
  0x2d   :  { %1308 = vmatpush3.bf16.msra.mxu1 %v1391_v55  ;;  %1287 = vmatprep.subr.bf16.mxu0 %v1392_v56 }
  0x2e   :  { %1309 = vmatprep.subr.bf16.mxu1 %v1393_v57 }
  0x30   :  { %1288 = vmatpush3.bf16.msra.mxu0 %v1394_v58 }
  0x31   :  { %1310 = vmatpush3.bf16.msra.mxu1 %v1395_v59  ;;  %1289 = vmatprep.subr.bf16.mxu0 %v1396_v60 }
  0x32   :  { %1311 = vmatprep.subr.bf16.mxu1 %v1397_v61 }
  0x34   :  { %1290 = vmatpush3.bf16.msra.mxu0 %v1398_v62 }
  0x35   :  { %1312 = vmatpush3.bf16.msra.mxu1 %v1399_v63  ;;  %1291 = vmatprep.subr.bf16.mxu0 %v1400_v0 }
  0x36   :  { %1313 = vmatprep.subr.bf16.mxu1 %v1401_v1 }
  0x38   :  { %1292 = vmatpush3.bf16.msra.mxu0 %v1402_v2 }
  0x39   :  { %1314 = vmatpush3.bf16.msra.mxu1 %v1403_v3  ;;  %1293 = vmatprep.subr.bf16.mxu0 %v1404_v4 }
  0x3a   :  { %1315 = vmatprep.subr.bf16.mxu1 %v1405_v5 }
  0x3c   :  { %1294 = vmatpush3.bf16.msra.mxu0 %v1406_v6 }
  0x3d   :  { %1316 = vmatpush3.bf16.msra.mxu1 %v1407_v7  ;;  %1295 = vmatprep.subr.bf16.mxu0 %v1408_v8 }
  0x3e   :  { %1317 = vmatprep.subr.bf16.mxu1 %v1409_v9 }
  0x40   :  { %1296 = vmatpush3.bf16.msra.mxu0 %v1410_v10 }
  0x41   :  { %1318 = vmatpush3.bf16.msra.mxu1 %v1411_v11  ;;  %842 = vmatprep.subr.bf16.mxu0 %v1414_v25 }
  0x43   :  { %675 = vmatmul.mubr.bf16.vlgmr.msra.gmra.mxu0 %v44_v21 }
  0x44   :  { %716 = vmatmul.mubr.bf16.vlgmr.msra.gmra.mxu1 %v46_v23  ;;  %843 = vmatpush1.bf16.msra.mxu0 %v1412_v24 }
  0x45   :  { %844 = vmatprep.subr.bf16.mxu0 %v1417_v26  ;;  %874 = vmatprep.mubr.bf16.mxu0 %v1456_v40  ;;  %v1448_v40 = vld [vmem:[%s1882_s5 + $0x48] sm:$0xff]  }
  0x48   :  { %845 = vmatpush1.bf16.msra.mxu0 %v1415_v27 }
  0x49   :  { %846 = vmatprep.subr.bf16.mxu0 %v1420_v28  ;;  %v1436_v28 = vld [vmem:[%s1882_s5 + $0x78] sm:$0xff]  }
  0x4a   :  { %1325 = vmatprep.subr.bf16.mxu1 %v1436_v28 }
  0x4c   :  { %847 = vmatpush1.bf16.msra.mxu0 %v1418_v29  ;;  %v1437_v29 = vld [vmem:[%s1882_s5 + $0x38] sm:$0xff]  }
  0x4d   :  { %848 = vmatprep.subr.bf16.mxu0 %v1423_v30  ;;  %1326 = vmatpush3.bf16.msra.mxu1 %v1437_v29  ;;  %v1438_v30 = vld [vmem:[%s1882_s5 + $0x70] sm:$0xff]  }
  0x4e   :  { %1327 = vmatprep.subr.bf16.mxu1 %v1438_v30 }
  0x50   :  { %849 = vmatpush1.bf16.msra.mxu0 %v1421_v31  ;;  %v1439_v31 = vld [vmem:[%s1882_s5 + $0x30] sm:$0xff]  }
  0x51   :  { %850 = vmatprep.subr.bf16.mxu0 %v1426_v32  ;;  %v1440_v32 = vld [vmem:[%s1882_s5 + $0x68] sm:$0xff]   ;;  %1328 = vmatpush3.bf16.msra.mxu1 %v1439_v31 }
  0x52   :  { %1329 = vmatprep.subr.bf16.mxu1 %v1440_v32 }
  0x54   :  { %851 = vmatpush1.bf16.msra.mxu0 %v1424_v33  ;;  %v1441_v33 = vld [vmem:[%s1882_s5 + $0x28] sm:$0xff]  }
  0x55   :  { %852 = vmatprep.subr.bf16.mxu0 %v1429_v34  ;;  %v1442_v34 = vld [vmem:[%s1882_s5 + $0x60] sm:$0xff]   ;;  %1330 = vmatpush3.bf16.msra.mxu1 %v1441_v33 }
  0x56   :  { %1331 = vmatprep.subr.bf16.mxu1 %v1442_v34 }
  0x58   :  { %853 = vmatpush1.bf16.msra.mxu0 %v1427_v35  ;;  %v1443_v35 = vld [vmem:[%s1882_s5 + $0x20] sm:$0xff]  }
  0x59   :  { %854 = vmatprep.subr.bf16.mxu0 %v1432_v36  ;;  %v1444_v36 = vld [vmem:[%s1882_s5 + $0x58] sm:$0xff]   ;;  %1332 = vmatpush3.bf16.msra.mxu1 %v1443_v35 }
  0x5a   :  { %1333 = vmatprep.subr.bf16.mxu1 %v1444_v36 }
  0x5c   :  { %855 = vmatpush1.bf16.msra.mxu0 %v1430_v37  ;;  %v1445_v37 = vld [vmem:[%s1882_s5 + $0x18] sm:$0xff]  }
  0x5d   :  { %856 = vmatprep.subr.bf16.mxu0 %v1435_v38  ;;  %v1446_v38 = vld [vmem:[%s1882_s5 + $0x50] sm:$0xff]   ;;  %1334 = vmatpush3.bf16.msra.mxu1 %v1445_v37 }
  0x5e   :  { %1335 = vmatprep.subr.bf16.mxu1 %v1446_v38 }
  0x60   :  { %857 = vmatpush1.bf16.msra.mxu0 %v1433_v39  ;;  %v1447_v39 = vld [vmem:[%s1882_s5 + $0x10] sm:$0xff]  }
  0x61   :  { %1336 = vmatpush3.bf16.msra.mxu1 %v1447_v39 }
  0x62   :  { %1337 = vmatprep.subr.bf16.mxu1 %v1448_v40 }
  0xe3   :  { %v1253_v41 = vpop.f32.mrf.mxu0 }
  0xe4   :  { %v1275_v42 = vpop.f32.mrf.mxu1 }
  0xe5   :  { %v1254_v43 = vpop.f32.mrf.mxu0 }
  0xe6   :  { %v1276_v44 = vpop.f32.mrf.mxu1  ;;  %v1255_v48 = vadd.f32 %v1254_v43, %v1253_v41  ;;  %v1449_v41 = vld [vmem:[%s1882_s5 + $0x8] sm:$0xff]   ;;  %v1451_v43 = vld [vmem:[%s1882_s5] sm:$0xff]  }
  0xe7   :  { %v1256_v45 = vpop.f32.mrf.mxu0  ;;  %v1277_v49 = vadd.f32 %v1276_v44, %v1275_v42  ;;  %v1450_v42 = vld [vmem:[%s1882_s5 + $0x40] sm:$0xff]   ;;  %1338 = vmatpush3.bf16.msra.mxu1 %v1449_v41 }
  0xe8   :  { %v1278_v46 = vpop.f32.mrf.mxu1  ;;  %1339 = vmatprep.subr.bf16.mxu1 %v1450_v42 }
  0xe9   :  { %v1257_v47 = vpop.f32.mrf.mxu0  ;;  %v636_v54 = vadd.f32 %v1277_v49, %v1255_v48 }
  0xea   :  { %v1279_v50 = vpop.f32.mrf.mxu1  ;;  %v1258_v55 = vadd.f32 %v1257_v47, %v1256_v45  ;;  %v916_v47 = vlaneseq }
  0xeb   :  { %v1280_v56 = vadd.f32 %v1279_v50, %v1278_v46  ;;  %1340 = vmatpush3.bf16.msra.mxu1 %v1451_v43 }
  0xed   :  { %v639_v0 = vadd.f32 %v1280_v56, %v1258_v55 }
 0x103   :  { %v1297_v51 = vpop.f32.mrf.mxu0 }
 0x104   :  { %v1319_v52 = vpop.f32.mrf.mxu1 }
 0x105   :  { %v1298_v53 = vpop.f32.mrf.mxu0 }
 0x106   :  { %v1299_v57 = vadd.f32 %v1298_v53, %v1297_v51  ;;  %v1320_v58 = vpop.f32.mrf.mxu1  ;;  %v917_v51 = vshrl.u32 %v916_v47, 7 }
 0x107   :  { %v1300_v59 = vpop.f32.mrf.mxu0  ;;  %v1321_v61 = vadd.f32 %v1320_v58, %v1319_v52 }
 0x108   :  { %v677_v60 = vadd.f32 %v1299_v57, %v636_v54  ;;  %v1322_v62 = vpop.f32.mrf.mxu1  ;;  %v918_v52 = vsub.s32 0, %v917_v51  ;;  %v922_v53 = vsub.s32 1, %v917_v51  ;;  %v910_v54 = vld [vmem:[%s1883_s3] sm:$0x3] }
 0x109   :  { %v1301_v63 = vpop.f32.mrf.mxu0  ;;  %v934_v57 = vld [vmem:[%s1884_s4] sm:$0x3] }
 0x10a   :  { %v718_v1 = vadd.f32 %v1321_v61, %v677_v60  ;;  %v1302_v2 = vadd.f32 %v1301_v63, %v1300_v59  ;;  %v1323_v3 = vpop.f32.mrf.mxu1  ;;  %v919_v55 = vrot.slane %v910_v54, %v918_v52  ;;  %v923_v56 = vrot.slane %v910_v54, %v922_v53 }
 0x10b   :  { %v1324_v5 = vadd.f32 %v1323_v3, %v1322_v62  ;;  %v947_v60 = vrot.slane %v934_v57, %v922_v53  ;;  %v943_v62 = vrot.slane %v934_v57, %v918_v52 }
 0x10c   :  { %1134 = vst [vmem:[%s1881_s6 + $0x8] sm:$0xff] %v718_v1  ;;  %v680_v4 = vadd.f32 %v1302_v2, %v639_v0 }
 0x10e   :  { %v721_v6 = vadd.f32 %v1324_v5, %v680_v4 }
 0x110   :  { %v745_v7 = vpack.c.bf16 %v721_v6, %v718_v1  ;;  %1136 = vst [vmem:[%s1881_s6 + $0x18] sm:$0xff] %v721_v6 }
 0x112   :  { %875 = vmatmul.mubr.bf16.vlgmr.msra.gmra.mxu0 %v745_v7 }
 0x1d2   :  { %v1786_v8 = vpop.f32.mrf.mxu0 }
 0x1d4   :  { %v1788_v9 = vpop.f32.mrf.mxu0 }
 0x1d5   :  { %v885_v10 = vadd.f32 %v1788_v9, %v1786_v8 }
 0x1d6   :  { %v1792_v11 = vpop.f32.mrf.mxu0 }
 0x1d7   :  { %886 = vadd.xlane.f32.xlu0 %v885_v10 }
 0x1d8   :  { %v1794_v12 = vpop.f32.mrf.mxu0 }
 0x1d9   :  { %v888_v13 = vadd.f32 %v1794_v12, %v1792_v11 }
 0x1db   :  { %889 = vadd.xlane.f32.xlu0 %v888_v13 }
 0x260   :  { %v887_v14 = vpop.xlane.xlu0 %886 }
 0x261   :  { %v1798_v15 = vmul.f32 0.00390625, %v887_v14 }
 0x263   :  { %v894_v16 = vsub.f32 %v1786_v8, %v1798_v15  ;;  %v895_v17 = vsub.f32 %v1788_v9, %v1798_v15 }
 0x264   :  { %v890_v18 = vpop.xlane.xlu0 %889 }
 0x265   :  { %v1804_v19 = vmul.f32 0.00390625, %v890_v18  ;;  %v898_v20 = vmul.f32 %v894_v16, %v894_v16  ;;  %v899_v21 = vmul.f32 %v895_v17, %v895_v17 }
 0x267   :  { %v902_v22 = vadd.f32 %v899_v21, %v898_v20  ;;  %v896_v23 = vsub.f32 %v1792_v11, %v1804_v19  ;;  %v897_v24 = vsub.f32 %v1794_v12, %v1804_v19 }
 0x269   :  { %903 = vadd.xlane.f32.xlu1 %v902_v22  ;;  %v900_v25 = vmul.f32 %v896_v23, %v896_v23  ;;  %v901_v26 = vmul.f32 %v897_v24, %v897_v24 }
 0x26b   :  { %v905_v27 = vadd.f32 %v901_v26, %v900_v25 }
 0x26d   :  { %906 = vadd.xlane.f32.xlu1 %v905_v27 }
 0x2f2   :  { %v904_v44 = vpop.xlane.xlu1 %903 }
 0x2f3   :  { %v908_v45 = vmul.f32 0.00390625, %v904_v44 }
 0x2f5   :  { %v911_v46 = vadd.f32 1e-05, %v908_v45 }
 0x2f6   :  { %v907_v48 = vpop.xlane.xlu1 %906 }
 0x2f7   :  { %1452 = vrsqrt.f32 %v911_v46  ;;  %v909_v49 = vmul.f32 0.00390625, %v907_v48 }
 0x2f9   :  { %v912_v50 = vadd.f32 1e-05, %v909_v49 }
 0x2fb   :  { %1454 = vrsqrt.f32 %v912_v50 }
 0x304   :  { %v1453_v58 = vpop.eup %1452 }
 0x305   :  { %v927_v59 = vmul.f32 %v1453_v58, %v923_v56  ;;  %v926_v61 = vmul.f32 %v1453_v58, %v919_v55 }
 0x307   :  { %v936_v63 = vmul.f32 %v927_v59, %v1798_v15  ;;  %v935_v0 = vmul.f32 %v926_v61, %v1798_v15  ;;  %v931_v6 = vmul.f32 %v927_v59, %v1788_v9  ;;  %v930_v10 = vmul.f32 %v926_v61, %v1786_v8 }
 0x308   :  { %v1455_v1 = vpop.eup %1454 }
 0x309   :  { %v929_v2 = vmul.f32 %v1455_v1, %v923_v56  ;;  %v951_v3 = vsub.f32 %v947_v60, %v936_v63  ;;  %v928_v4 = vmul.f32 %v1455_v1, %v919_v55  ;;  %v950_v5 = vsub.f32 %v943_v62, %v935_v0 }
 0x30b   :  { %v938_v7 = vmul.f32 %v929_v2, %v1804_v19  ;;  %v937_v13 = vmul.f32 %v928_v4, %v1804_v19  ;;  %v933_v14 = vmul.f32 %v929_v2, %v1794_v12  ;;  %v955_v17 = vadd.f32 %v951_v3, %v931_v6 }
 0x30c   :  { %v932_v18 = vmul.f32 %v928_v4, %v1792_v11  ;;  %v954_v20 = vadd.f32 %v950_v5, %v930_v10 }
 0x30d   :  { %v953_v16 = vsub.f32 %v947_v60, %v938_v7  ;;  %v952_v15 = vsub.f32 %v943_v62, %v937_v13  ;;  %v959_v23 = vmax.f32 %v955_v17, 0.0 }
 0x30e   :  { %v958_v25 = vmax.f32 %v954_v20, 0.0 }
 0x30f   :  { %v957_v21 = vadd.f32 %v953_v16, %v933_v14  ;;  %v956_v22 = vadd.f32 %v952_v15, %v932_v18 }
 0x311   :  { %v961_v24 = vmax.f32 %v957_v21, 0.0  ;;  %v960_v9 = vmax.f32 %v956_v22, 0.0 }
 0x313   :  { %v963_v26 = vpack.c.bf16 %v961_v24, %v959_v23  ;;  %v962_v27 = vpack.c.bf16 %v960_v9, %v958_v25 }
 0x315   :  { %1124 = vmatprep.mubr.bf16.mxu1 %v963_v26 }
 0x316   :  { %1125 = vmatmul.mubr.bf16.vlgmr.msra.gmra.mxu1 %v962_v27 }
 0x3d6   :  { %v1341_v8 = vpop.f32.mrf.mxu1 }
 0x3d8   :  { %v1342_v19 = vpop.f32.mrf.mxu1 }
 0x3d9   :  { %v1343_v28 = vadd.f32 %v1342_v19, %v1341_v8 }
 0x3da   :  { %v1344_v12 = vpop.f32.mrf.mxu1 }
 0x3db   :  { %1133 = vst [vmem:[%s1881_s6] sm:$0xff] %v1343_v28 }
 0x3dc   :  { %v1345_v11 = vpop.f32.mrf.mxu1 }
 0x3dd   :  { %v1346_v29 = vadd.f32 %v1345_v11, %v1344_v12 }
 0x3df   :  { %1135 = vst [vmem:[%s1881_s6 + $0x10] sm:$0xff] %v1346_v29 }

</bundles_post_ra>
